<compile_context>
chip_gen: v7x
topology: tpu7x:2x2x1
jax: 0.10.0
libtpu: 0.0.40
codegen_flags: <defaults>
</compile_context>

<pallas_src>
import functools

import numpy as np

import jax
import jax.numpy as jnp
from jax import lax
from jax.experimental import pallas as pl
from jax.experimental.pallas import tpu as pltpu


def _ghost_kernel(w1_ref, b1_ref, w2_ref, b2_ref, msk_ref, x_ref, o_ref, *,
                  prim_taps, ghost_taps, W, ghost_c, g_per, has_relu,
                  mxu_bf16):
    """Fused GhostModule forward for one grid step.

    w1_ref : (m, 9*cin)      fused per-tap primary weights (BN folded)
    b1_ref : (m, 1)          primary bias (BN folded)
    w2_ref : (ghost_c, d*d)  per-tap depthwise ghost coefficients (BN folded)
    b2_ref : (ghost_c, 1)    ghost bias (BN folded)
    msk_ref: (n_off, L)      border masks (one row per nonzero tap offset)
    x_ref  : (cin, L)        L = batch_block * H * W (batch folded into lanes)
    o_ref  : (m + ghost_c, L)
    """
    f32 = jnp.float32
    L = x_ref.shape[-1]

    # Hoisted, loop-invariant loads (done once per grid step).
    x = x_ref[...].astype(f32)
    w1 = w1_ref[...]
    b1 = b1_ref[...].astype(f32)
    w2 = w2_ref[...].astype(f32)
    b2 = b2_ref[...].astype(f32)
    masks = msk_ref[...]

    def shifted(f, dy, dx, row):
        # f viewed per-image as (C, H, W): returns f[:, h+dy, w+dx] (0 outside
        # the image), flattened.  The roll over the combined batch*HW lane
        # axis only pulls cross-image / wrapped values at positions the border
        # mask zeroes, so folding the batch into lanes is safe.
        k = dy * W + dx
        if k != 0:
            f = pltpu.roll(f, shift=(-k) % L, axis=1)
        if row >= 0:                              # row == -1 <=> (dy, dx) == (0, 0)
            f = f * masks[row:row + 1, :]         # (1, L) broadcast over channels
        return f

    # ---- primary 3x3 conv (+ folded BN, + ReLU): one K = 9*cin MXU matmul ----
    views = [shifted(x, dy, dx, row) for (dy, dx, row) in prim_taps]
    xs = jnp.concatenate(views, axis=0)           # (9*cin, L)
    if mxu_bf16:
        xs = xs.astype(jnp.bfloat16)
    y1 = jnp.dot(w1, xs, preferred_element_type=f32) + b1
    if has_relu:
        y1 = jnp.maximum(y1, 0.0)

    # ---- ghost dxd grouped conv (1 input channel per group) on the VPU ----
    y1r = y1 if g_per == 1 else jnp.repeat(y1, g_per, axis=0)   # (ghost_c, L)
    acc2 = jnp.zeros((ghost_c, L), f32)
    for t, (dy, dx, row) in enumerate(ghost_taps):
        acc2 = acc2 + w2[:, t:t + 1] * shifted(y1r, dy, dx, row)
    y2 = acc2 + b2
    if has_relu:
        y2 = jnp.maximum(y2, 0.0)

    # Single full-channel, unmasked, lane-dense store: [primary | ghost].
    o_ref[...] = jnp.concatenate([y1, y2], axis=0).astype(o_ref.dtype)


def _fold_bn(w, b, gamma, beta, mean, var, eps=1e-5):
    """Fold BatchNorm (eval semantics) into conv weight/bias."""
    scale = gamma / jnp.sqrt(var + eps)
    return w * scale[:, None, None, None], (b - mean) * scale + beta


def _choose_batch_block(N, cin, out_c, HW, n_off, itemsize, budget=10 << 20):
    """Largest divisor of N whose per-step VMEM footprint fits `budget`,
    keeping the grid >= 2 (and even when possible) for v7x's two TCs."""
    feasible = []
    for bb in range(1, N + 1):
        if N % bb:
            continue
        grid = N // bb
        if N >= 2 and grid < 2:
            continue
        blk = bb * HW
        vmem = (2 * blk * (cin + out_c) * itemsize      # double-buffered x / out
                + n_off * blk * 4                       # resident border masks
                + (9 * cin + 4 * out_c) * blk * 4)      # stacked operand + f32 temps
        if vmem <= budget:
            feasible.append(bb)
    if not feasible:
        return 1
    even = [bb for bb in feasible if (N // bb) % 2 == 0]
    return max(even) if even else max(feasible)


def ghost_module_forward(x, params, *, s, d, has_relu, batch_block=None,
                         mxu_bf16=False):
    N, cin, H, W = x.shape
    HW = H * W
    out_channels = params["out_channels"]
    m = out_channels // s                  # == int(out_channels / s) in the module
    ghost_c = out_channels - m
    assert ghost_c % m == 0, "nn.Conv2d(groups=m) requires ghost channels % m == 0"
    g_per = ghost_c // m
    p2 = (d - 1) // 2                      # padding=int((d - 1) / 2), as in the module

    # Static tap offsets + shared border-mask rows (center offset needs no mask).
    prim_off = [(ky - 1, kx - 1) for ky in range(3) for kx in range(3)]
    ghost_off = [(ky - p2, kx - p2) for ky in range(d) for kx in range(d)]
    nz = sorted(set(prim_off + ghost_off) - {(0, 0)})
    row_of = {o: i for i, o in enumerate(nz)}
    n_off = len(nz)
    prim_taps = tuple((dy, dx, row_of.get((dy, dx), -1)) for (dy, dx) in prim_off)
    ghost_taps = tuple((dy, dx, row_of.get((dy, dx), -1)) for (dy, dx) in ghost_off)

    if batch_block is None:
        batch_block = _choose_batch_block(N, cin, out_channels, HW, n_off,
                                          x.dtype.itemsize)
    assert N % batch_block == 0
    L = batch_block * HW

    # ---- fold BN and fuse taps (host-side parameter glue) ----
    w1_eff, b1_eff = _fold_bn(params["w1"], params["b1"], params["g1"],
                              params["be1"], params["mu1"], params["var1"])
    w2_eff, b2_eff = _fold_bn(params["w2"], params["b2"], params["g2"],
                              params["be2"], params["mu2"], params["var2"])
    w_dt = jnp.bfloat16 if mxu_bf16 else jnp.float32
    # Columns ordered (tap-major, channel-minor) to match the in-kernel concat.
    w1_fused = jnp.transpose(w1_eff, (0, 2, 3, 1)).reshape(m, 9 * cin).astype(w_dt)
    w2_coef = w2_eff[:, 0, :, :].reshape(ghost_c, d * d).astype(jnp.float32)
    b1_col = b1_eff.reshape(m, 1).astype(jnp.float32)
    b2_col = b2_eff.reshape(ghost_c, 1).astype(jnp.float32)

    # Host-precomputed border masks: one (1, L) row per nonzero offset, tiled
    # per image so they also kill cross-image values introduced by the roll.
    hh, ww = np.meshgrid(np.arange(H), np.arange(W), indexing="ij")
    rows = []
    for dy, dx in nz:
        ok = ((hh + dy >= 0) & (hh + dy < H) & (ww + dx >= 0) & (ww + dx < W))
        rows.append(np.tile(ok.reshape(-1).astype(np.float32), batch_block))
    masks = jnp.asarray(np.stack(rows, axis=0))           # (n_off, L)

    # Lane-dense layout: batch folded into the trailing axis (layout glue).
    x2 = jnp.transpose(x.reshape(N, cin, HW), (1, 0, 2)).reshape(cin, N * HW)

    kernel = functools.partial(
        _ghost_kernel, prim_taps=prim_taps, ghost_taps=ghost_taps, W=W,
        ghost_c=ghost_c, g_per=g_per, has_relu=has_relu, mxu_bf16=mxu_bf16)

    isz = x.dtype.itemsize
    flops = 2 * N * HW * (m * 9 * cin + ghost_c * d * d)
    bytes_accessed = int(isz * N * HW * (cin + out_channels)
                         + 4 * masks.size
                         + w1_fused.size * w1_fused.dtype.itemsize
                         + 4 * (w2_coef.size + m + ghost_c))

    out2 = pl.pallas_call(
        kernel,
        out_shape=jax.ShapeDtypeStruct((out_channels, N * HW), x.dtype),
        grid_spec=pltpu.PrefetchScalarGridSpec(
            num_scalar_prefetch=0,
            grid=(N // batch_block,),
            in_specs=[
                pl.BlockSpec((m, 9 * cin), lambda n: (0, 0)),        # fused w1
                pl.BlockSpec((m, 1), lambda n: (0, 0)),              # b1
                pl.BlockSpec((ghost_c, d * d), lambda n: (0, 0)),    # w2 coeffs
                pl.BlockSpec((ghost_c, 1), lambda n: (0, 0)),        # b2
                pl.BlockSpec((n_off, L), lambda n: (0, 0)),          # border masks
                pl.BlockSpec((cin, L), lambda n: (0, n)),            # x block
            ],
            out_specs=pl.BlockSpec((out_channels, L), lambda n: (0, n)),
        ),
        compiler_params=pltpu.CompilerParams(
            dimension_semantics=("parallel",),
            vmem_limit_bytes=32 << 20),
        cost_estimate=pl.CostEstimate(flops=flops, transcendentals=0,
                                      bytes_accessed=bytes_accessed),
    )(w1_fused, b1_col, w2_coef, b2_col, masks, x2)

    return jnp.transpose(out2.reshape(out_channels, N, HW),
                         (1, 0, 2)).reshape(N, out_channels, H, W)


def ghost_module_reference(x, params, *, s, d, has_relu):
    """Pure-JAX reference (same math as the PyTorch module in eval mode)."""
    out_channels = params["out_channels"]
    m = out_channels // s
    p2 = (d - 1) // 2
    hp = lax.Precision.HIGHEST
    w1_eff, b1_eff = _fold_bn(params["w1"], params["b1"], params["g1"],
                              params["be1"], params["mu1"], params["var1"])
    w2_eff, b2_eff = _fold_bn(params["w2"], params["b2"], params["g2"],
                              params["be2"], params["mu2"], params["var2"])
    y1 = lax.conv_general_dilated(x, w1_eff, (1, 1), [(1, 1), (1, 1)],
                                  dimension_numbers=("NCHW", "OIHW", "NCHW"),
                                  precision=hp)
    y1 = y1 + b1_eff[None, :, None, None]
    if has_relu:
        y1 = jnp.maximum(y1, 0.0)
    y2 = lax.conv_general_dilated(y1, w2_eff, (1, 1), [(p2, p2), (p2, p2)],
                                  dimension_numbers=("NCHW", "OIHW", "NCHW"),
                                  feature_group_count=m, precision=hp)
    y2 = y2 + b2_eff[None, :, None, None]
    if has_relu:
        y2 = jnp.maximum(y2, 0.0)
    return jnp.concatenate([y1, y2], axis=1)


def _make_params(key, in_channels, out_channels, s, d):
    m = out_channels // s
    ghost_c = out_channels - m
    ks = jax.random.split(key, 12)
    return {
        "out_channels": out_channels,
        # primary conv (3x3) + BN
        "w1": 0.1 * jax.random.normal(ks[0], (m, in_channels, 3, 3), jnp.float32),
        "b1": 0.05 * jax.random.normal(ks[1], (m,), jnp.float32),
        "g1": 1.0 + 0.1 * jax.random.normal(ks[2], (m,), jnp.float32),
        "be1": 0.05 * jax.random.normal(ks[3], (m,), jnp.float32),
        "mu1": 0.05 * jax.random.normal(ks[4], (m,), jnp.float32),
        "var1": 0.5 + jax.random.uniform(ks[5], (m,), jnp.float32),
        # ghost grouped conv (dxd, groups=m -> 1 input channel per group) + BN
        "w2": 0.1 * jax.random.normal(ks[6], (ghost_c, 1, d, d), jnp.float32),
        "b2": 0.05 * jax.random.normal(ks[7], (ghost_c,), jnp.float32),
        "g2": 1.0 + 0.1 * jax.random.normal(ks[8], (ghost_c,), jnp.float32),
        "be2": 0.05 * jax.random.normal(ks[9], (ghost_c,), jnp.float32),
        "mu2": 0.05 * jax.random.normal(ks[10], (ghost_c,), jnp.float32),
        "var2": 0.5 + jax.random.uniform(ks[11], (ghost_c,), jnp.float32),
    }


if __name__ == "__main__":
    key = jax.random.PRNGKey(0)
    k0, k1, k2, k3 = jax.random.split(key, 4)

    # --- test 1: GhostModule(4, 8, s=2, d=3, has_relu=True), N=2 ---
    # auto batch_block -> 1 (grid of 2 parallel steps; feeds both v7x TCs)
    in_channels, out_channels, s, d, has_relu = 4, 8, 2, 3, True
    N, H, W = 2, 16, 16
    x = jax.random.normal(k0, (N, in_channels, H, W), jnp.float32)
    params = _make_params(k1, in_channels, out_channels, s, d)

    out = jax.block_until_ready(
        ghost_module_forward(x, params, s=s, d=d, has_relu=has_relu))
    ref = jax.block_until_ready(
        ghost_module_reference(x, params, s=s, d=d, has_relu=has_relu))
    assert out.shape == (N, out_channels, H, W), out.shape
    assert jnp.allclose(out, ref, atol=2e-3, rtol=2e-3), \
        float(jnp.max(jnp.abs(out - ref)))

    # --- test 2: batch folded into the lane axis with batch_block > 1 ---
    # (asserts the roll + border-mask trick is correct across image boundaries)
    N2, has_relu2 = 4, False
    x2 = jax.random.normal(k2, (N2, in_channels, H, W), jnp.float32)
    params2 = _make_params(k3, in_channels, out_channels, s, d)
    out2 = jax.block_until_ready(
        ghost_module_forward(x2, params2, s=s, d=d, has_relu=has_relu2,
                             batch_block=2))
    ref2 = jax.block_until_ready(
        ghost_module_reference(x2, params2, s=s, d=d, has_relu=has_relu2))
    assert out2.shape == (N2, out_channels, H, W), out2.shape
    assert jnp.allclose(out2, ref2, atol=2e-3, rtol=2e-3), \
        float(jnp.max(jnp.abs(out2 - ref2)))

    print("KERNEL_OK")
</pallas_src>

<mosaic_0001>
module attributes {stable_mosaic.version = 11 : i64} {
  func.func @_ghost_kernel(%arg0: i32, %arg1: memref<4x36xf32, #tpu.memory_space<vmem>>, %arg2: memref<4x1xf32, #tpu.memory_space<vmem>>, %arg3: memref<4x9xf32, #tpu.memory_space<vmem>>, %arg4: memref<4x1xf32, #tpu.memory_space<vmem>>, %arg5: memref<8x256xf32, #tpu.memory_space<vmem>>, %arg6: memref<4x256xf32, #tpu.memory_space<vmem>>, %arg7: memref<8x256xf32, #tpu.memory_space<vmem>>) attributes {dimension_semantics = [#tpu.dimension_semantics<parallel>], iteration_bounds = array<i64: 2>, scalar_prefetch = 0 : i64, scratch_operands = 0 : i64, tpu.core_type = #tpu.core_type<tc>, window_params = [{pipeline_mode = #tpu.pipeline_mode<synchronous>, transform_indices = @transform_0, window_bounds = array<i64: 4, 36>}, {pipeline_mode = #tpu.pipeline_mode<synchronous>, transform_indices = @transform_1, window_bounds = array<i64: 4, 1>}, {pipeline_mode = #tpu.pipeline_mode<synchronous>, transform_indices = @transform_2, window_bounds = array<i64: 4, 9>}, {pipeline_mode = #tpu.pipeline_mode<synchronous>, transform_indices = @transform_3, window_bounds = array<i64: 4, 1>}, {pipeline_mode = #tpu.pipeline_mode<synchronous>, transform_indices = @transform_4, window_bounds = array<i64: 8, 256>}, {transform_indices = @transform_5, window_bounds = array<i64: 4, 256>}, {transform_indices = @transform_6, window_bounds = array<i64: 8, 256>}]} {
    %c0 = arith.constant 0 : index
    %c0_0 = arith.constant 0 : index
    %0 = vector.load %arg6[%c0, %c0_0] : memref<4x256xf32, #tpu.memory_space<vmem>>, vector<4x256xf32>
    %c0_1 = arith.constant 0 : index
    %c0_2 = arith.constant 0 : index
    %1 = vector.load %arg1[%c0_1, %c0_2] : memref<4x36xf32, #tpu.memory_space<vmem>>, vector<4x36xf32>
    %c0_3 = arith.constant 0 : index
    %c0_4 = arith.constant 0 : index
    %2 = vector.load %arg2[%c0_3, %c0_4] : memref<4x1xf32, #tpu.memory_space<vmem>>, vector<4x1xf32>
    %c0_5 = arith.constant 0 : index
    %c0_6 = arith.constant 0 : index
    %3 = vector.load %arg3[%c0_5, %c0_6] : memref<4x9xf32, #tpu.memory_space<vmem>>, vector<4x9xf32>
    %c0_7 = arith.constant 0 : index
    %c0_8 = arith.constant 0 : index
    %4 = vector.load %arg4[%c0_7, %c0_8] : memref<4x1xf32, #tpu.memory_space<vmem>>, vector<4x1xf32>
    %c0_9 = arith.constant 0 : index
    %c0_10 = arith.constant 0 : index
    %5 = vector.load %arg5[%c0_9, %c0_10] : memref<8x256xf32, #tpu.memory_space<vmem>>, vector<8x256xf32>
    %c17_i32 = arith.constant 17 : i32
    %6 = tpu.dynamic_rotate %0 by %c17_i32 dim 1 : vector<4x256xf32>, i32 -> vector<4x256xf32>
    %7 = vector.extract_strided_slice %5 {offsets = [0, 0], sizes = [1, 256], strides = [1, 1]} : vector<8x256xf32> to vector<1x256xf32>
    %8 = vector.broadcast %7 : vector<1x256xf32> to vector<4x256xf32>
    %9 = arith.mulf %6, %8 : vector<4x256xf32>
    %c16_i32 = arith.constant 16 : i32
    %10 = tpu.dynamic_rotate %0 by %c16_i32 dim 1 : vector<4x256xf32>, i32 -> vector<4x256xf32>
    %11 = vector.extract_strided_slice %5 {offsets = [1, 0], sizes = [1, 256], strides = [1, 1]} : vector<8x256xf32> to vector<1x256xf32>
    %12 = vector.broadcast %11 : vector<1x256xf32> to vector<4x256xf32>
    %13 = arith.mulf %10, %12 : vector<4x256xf32>
    %c15_i32 = arith.constant 15 : i32
    %14 = tpu.dynamic_rotate %0 by %c15_i32 dim 1 : vector<4x256xf32>, i32 -> vector<4x256xf32>
    %15 = vector.extract_strided_slice %5 {offsets = [2, 0], sizes = [1, 256], strides = [1, 1]} : vector<8x256xf32> to vector<1x256xf32>
    %16 = vector.broadcast %15 : vector<1x256xf32> to vector<4x256xf32>
    %17 = arith.mulf %14, %16 : vector<4x256xf32>
    %c1_i32 = arith.constant 1 : i32
    %18 = tpu.dynamic_rotate %0 by %c1_i32 dim 1 : vector<4x256xf32>, i32 -> vector<4x256xf32>
    %19 = vector.extract_strided_slice %5 {offsets = [3, 0], sizes = [1, 256], strides = [1, 1]} : vector<8x256xf32> to vector<1x256xf32>
    %20 = vector.broadcast %19 : vector<1x256xf32> to vector<4x256xf32>
    %21 = arith.mulf %18, %20 : vector<4x256xf32>
    %c255_i32 = arith.constant 255 : i32
    %22 = tpu.dynamic_rotate %0 by %c255_i32 dim 1 : vector<4x256xf32>, i32 -> vector<4x256xf32>
    %23 = vector.extract_strided_slice %5 {offsets = [4, 0], sizes = [1, 256], strides = [1, 1]} : vector<8x256xf32> to vector<1x256xf32>
    %24 = vector.broadcast %23 : vector<1x256xf32> to vector<4x256xf32>
    %25 = arith.mulf %22, %24 : vector<4x256xf32>
    %c241_i32 = arith.constant 241 : i32
    %26 = tpu.dynamic_rotate %0 by %c241_i32 dim 1 : vector<4x256xf32>, i32 -> vector<4x256xf32>
    %27 = vector.extract_strided_slice %5 {offsets = [5, 0], sizes = [1, 256], strides = [1, 1]} : vector<8x256xf32> to vector<1x256xf32>
    %28 = vector.broadcast %27 : vector<1x256xf32> to vector<4x256xf32>
    %29 = arith.mulf %26, %28 : vector<4x256xf32>
    %c240_i32 = arith.constant 240 : i32
    %30 = tpu.dynamic_rotate %0 by %c240_i32 dim 1 : vector<4x256xf32>, i32 -> vector<4x256xf32>
    %31 = vector.extract_strided_slice %5 {offsets = [6, 0], sizes = [1, 256], strides = [1, 1]} : vector<8x256xf32> to vector<1x256xf32>
    %32 = vector.broadcast %31 : vector<1x256xf32> to vector<4x256xf32>
    %33 = arith.mulf %30, %32 : vector<4x256xf32>
    %c239_i32 = arith.constant 239 : i32
    %34 = tpu.dynamic_rotate %0 by %c239_i32 dim 1 : vector<4x256xf32>, i32 -> vector<4x256xf32>
    %35 = vector.extract_strided_slice %5 {offsets = [7, 0], sizes = [1, 256], strides = [1, 1]} : vector<8x256xf32> to vector<1x256xf32>
    %36 = vector.broadcast %35 : vector<1x256xf32> to vector<4x256xf32>
    %37 = arith.mulf %34, %36 : vector<4x256xf32>
    %38 = tpu.concatenate %9, %13, %17, %21, %0, %25, %29, %33, %37 in 0 : vector<4x256xf32>, vector<4x256xf32>, vector<4x256xf32>, vector<4x256xf32>, vector<4x256xf32>, vector<4x256xf32>, vector<4x256xf32>, vector<4x256xf32>, vector<4x256xf32> -> vector<36x256xf32>
    %cst = arith.constant dense<0.000000e+00> : vector<4x256xf32>
    %39 = tpu.matmul %1, %38, %cst {dimension_numbers = #tpu.dot_dimension_numbers<[1], [0], [0], [1], [0, 0, 1, 1], [], []>} : vector<4x36xf32>, vector<36x256xf32>, vector<4x256xf32> -> vector<4x256xf32>
    %40 = vector.broadcast %2 : vector<4x1xf32> to vector<4x256xf32>
    %41 = arith.addf %39, %40 : vector<4x256xf32>
    %cst_11 = arith.constant 0.000000e+00 : f32
    %42 = vector.broadcast %cst_11 : f32 to vector<4x256xf32>
    %43 = arith.maximumf %41, %42 : vector<4x256xf32>
    %cst_12 = arith.constant 0.000000e+00 : f32
    %44 = vector.broadcast %cst_12 : f32 to vector<4x256xf32>
    %45 = vector.extract_strided_slice %3 {offsets = [0, 0], sizes = [4, 1], strides = [1, 1]} : vector<4x9xf32> to vector<4x1xf32>
    %c17_i32_13 = arith.constant 17 : i32
    %46 = tpu.dynamic_rotate %43 by %c17_i32_13 dim 1 : vector<4x256xf32>, i32 -> vector<4x256xf32>
    %47 = vector.extract_strided_slice %5 {offsets = [0, 0], sizes = [1, 256], strides = [1, 1]} : vector<8x256xf32> to vector<1x256xf32>
    %48 = vector.broadcast %47 : vector<1x256xf32> to vector<4x256xf32>
    %49 = arith.mulf %46, %48 : vector<4x256xf32>
    %50 = vector.broadcast %45 : vector<4x1xf32> to vector<4x256xf32>
    %51 = arith.mulf %50, %49 : vector<4x256xf32>
    %52 = arith.addf %44, %51 : vector<4x256xf32>
    %53 = vector.extract_strided_slice %3 {offsets = [0, 1], sizes = [4, 1], strides = [1, 1]} : vector<4x9xf32> to vector<4x1xf32>
    %c16_i32_14 = arith.constant 16 : i32
    %54 = tpu.dynamic_rotate %43 by %c16_i32_14 dim 1 : vector<4x256xf32>, i32 -> vector<4x256xf32>
    %55 = vector.extract_strided_slice %5 {offsets = [1, 0], sizes = [1, 256], strides = [1, 1]} : vector<8x256xf32> to vector<1x256xf32>
    %56 = vector.broadcast %55 : vector<1x256xf32> to vector<4x256xf32>
    %57 = arith.mulf %54, %56 : vector<4x256xf32>
    %58 = vector.broadcast %53 : vector<4x1xf32> to vector<4x256xf32>
    %59 = arith.mulf %58, %57 : vector<4x256xf32>
    %60 = arith.addf %52, %59 : vector<4x256xf32>
    %61 = vector.extract_strided_slice %3 {offsets = [0, 2], sizes = [4, 1], strides = [1, 1]} : vector<4x9xf32> to vector<4x1xf32>
    %c15_i32_15 = arith.constant 15 : i32
    %62 = tpu.dynamic_rotate %43 by %c15_i32_15 dim 1 : vector<4x256xf32>, i32 -> vector<4x256xf32>
    %63 = vector.extract_strided_slice %5 {offsets = [2, 0], sizes = [1, 256], strides = [1, 1]} : vector<8x256xf32> to vector<1x256xf32>
    %64 = vector.broadcast %63 : vector<1x256xf32> to vector<4x256xf32>
    %65 = arith.mulf %62, %64 : vector<4x256xf32>
    %66 = vector.broadcast %61 : vector<4x1xf32> to vector<4x256xf32>
    %67 = arith.mulf %66, %65 : vector<4x256xf32>
    %68 = arith.addf %60, %67 : vector<4x256xf32>
    %69 = vector.extract_strided_slice %3 {offsets = [0, 3], sizes = [4, 1], strides = [1, 1]} : vector<4x9xf32> to vector<4x1xf32>
    %c1_i32_16 = arith.constant 1 : i32
    %70 = tpu.dynamic_rotate %43 by %c1_i32_16 dim 1 : vector<4x256xf32>, i32 -> vector<4x256xf32>
    %71 = vector.extract_strided_slice %5 {offsets = [3, 0], sizes = [1, 256], strides = [1, 1]} : vector<8x256xf32> to vector<1x256xf32>
    %72 = vector.broadcast %71 : vector<1x256xf32> to vector<4x256xf32>
    %73 = arith.mulf %70, %72 : vector<4x256xf32>
    %74 = vector.broadcast %69 : vector<4x1xf32> to vector<4x256xf32>
    %75 = arith.mulf %74, %73 : vector<4x256xf32>
    %76 = arith.addf %68, %75 : vector<4x256xf32>
    %77 = vector.extract_strided_slice %3 {offsets = [0, 4], sizes = [4, 1], strides = [1, 1]} : vector<4x9xf32> to vector<4x1xf32>
    %78 = vector.broadcast %77 : vector<4x1xf32> to vector<4x256xf32>
    %79 = arith.mulf %78, %43 : vector<4x256xf32>
    %80 = arith.addf %76, %79 : vector<4x256xf32>
    %81 = vector.extract_strided_slice %3 {offsets = [0, 5], sizes = [4, 1], strides = [1, 1]} : vector<4x9xf32> to vector<4x1xf32>
    %c255_i32_17 = arith.constant 255 : i32
    %82 = tpu.dynamic_rotate %43 by %c255_i32_17 dim 1 : vector<4x256xf32>, i32 -> vector<4x256xf32>
    %83 = vector.extract_strided_slice %5 {offsets = [4, 0], sizes = [1, 256], strides = [1, 1]} : vector<8x256xf32> to vector<1x256xf32>
    %84 = vector.broadcast %83 : vector<1x256xf32> to vector<4x256xf32>
    %85 = arith.mulf %82, %84 : vector<4x256xf32>
    %86 = vector.broadcast %81 : vector<4x1xf32> to vector<4x256xf32>
    %87 = arith.mulf %86, %85 : vector<4x256xf32>
    %88 = arith.addf %80, %87 : vector<4x256xf32>
    %89 = vector.extract_strided_slice %3 {offsets = [0, 6], sizes = [4, 1], strides = [1, 1]} : vector<4x9xf32> to vector<4x1xf32>
    %c241_i32_18 = arith.constant 241 : i32
    %90 = tpu.dynamic_rotate %43 by %c241_i32_18 dim 1 : vector<4x256xf32>, i32 -> vector<4x256xf32>
    %91 = vector.extract_strided_slice %5 {offsets = [5, 0], sizes = [1, 256], strides = [1, 1]} : vector<8x256xf32> to vector<1x256xf32>
    %92 = vector.broadcast %91 : vector<1x256xf32> to vector<4x256xf32>
    %93 = arith.mulf %90, %92 : vector<4x256xf32>
    %94 = vector.broadcast %89 : vector<4x1xf32> to vector<4x256xf32>
    %95 = arith.mulf %94, %93 : vector<4x256xf32>
    %96 = arith.addf %88, %95 : vector<4x256xf32>
    %97 = vector.extract_strided_slice %3 {offsets = [0, 7], sizes = [4, 1], strides = [1, 1]} : vector<4x9xf32> to vector<4x1xf32>
    %c240_i32_19 = arith.constant 240 : i32
    %98 = tpu.dynamic_rotate %43 by %c240_i32_19 dim 1 : vector<4x256xf32>, i32 -> vector<4x256xf32>
    %99 = vector.extract_strided_slice %5 {offsets = [6, 0], sizes = [1, 256], strides = [1, 1]} : vector<8x256xf32> to vector<1x256xf32>
    %100 = vector.broadcast %99 : vector<1x256xf32> to vector<4x256xf32>
    %101 = arith.mulf %98, %100 : vector<4x256xf32>
    %102 = vector.broadcast %97 : vector<4x1xf32> to vector<4x256xf32>
    %103 = arith.mulf %102, %101 : vector<4x256xf32>
    %104 = arith.addf %96, %103 : vector<4x256xf32>
    %105 = vector.extract_strided_slice %3 {offsets = [0, 8], sizes = [4, 1], strides = [1, 1]} : vector<4x9xf32> to vector<4x1xf32>
    %c239_i32_20 = arith.constant 239 : i32
    %106 = tpu.dynamic_rotate %43 by %c239_i32_20 dim 1 : vector<4x256xf32>, i32 -> vector<4x256xf32>
    %107 = vector.extract_strided_slice %5 {offsets = [7, 0], sizes = [1, 256], strides = [1, 1]} : vector<8x256xf32> to vector<1x256xf32>
    %108 = vector.broadcast %107 : vector<1x256xf32> to vector<4x256xf32>
    %109 = arith.mulf %106, %108 : vector<4x256xf32>
    %110 = vector.broadcast %105 : vector<4x1xf32> to vector<4x256xf32>
    %111 = arith.mulf %110, %109 : vector<4x256xf32>
    %112 = arith.addf %104, %111 : vector<4x256xf32>
    %113 = vector.broadcast %4 : vector<4x1xf32> to vector<4x256xf32>
    %114 = arith.addf %112, %113 : vector<4x256xf32>
    %cst_21 = arith.constant 0.000000e+00 : f32
    %115 = vector.broadcast %cst_21 : f32 to vector<4x256xf32>
    %116 = arith.maximumf %114, %115 : vector<4x256xf32>
    %117 = tpu.concatenate %43, %116 in 0 : vector<4x256xf32>, vector<4x256xf32> -> vector<8x256xf32>
    %c0_22 = arith.constant 0 : index
    %c0_23 = arith.constant 0 : index
    %118 = vector.load %arg7[%c0_22, %c0_23] : memref<8x256xf32, #tpu.memory_space<vmem>>, vector<8x256xf32>
    tpu.vector_store %arg7[%c0_22, %c0_23], %117 {strides = array<i32>} : memref<8x256xf32, #tpu.memory_space<vmem>>, vector<8x256xf32>,
    return
  }
  func.func @transform_0(%arg0: i32) -> (i32, i32) {
    %c0_i32 = arith.constant 0 : i32
    %c0_i32_0 = arith.constant 0 : i32
    %c0_i32_1 = arith.constant 0 : i32
    return %c0_i32, %c0_i32_0 : i32, i32
  }
  func.func @transform_1(%arg0: i32) -> (i32, i32) {
    %c0_i32 = arith.constant 0 : i32
    %c0_i32_0 = arith.constant 0 : i32
    %c0_i32_1 = arith.constant 0 : i32
    return %c0_i32, %c0_i32_0 : i32, i32
  }
  func.func @transform_2(%arg0: i32) -> (i32, i32) {
    %c0_i32 = arith.constant 0 : i32
    %c0_i32_0 = arith.constant 0 : i32
    %c0_i32_1 = arith.constant 0 : i32
    return %c0_i32, %c0_i32_0 : i32, i32
  }
  func.func @transform_3(%arg0: i32) -> (i32, i32) {
    %c0_i32 = arith.constant 0 : i32
    %c0_i32_0 = arith.constant 0 : i32
    %c0_i32_1 = arith.constant 0 : i32
    return %c0_i32, %c0_i32_0 : i32, i32
  }
  func.func @transform_4(%arg0: i32) -> (i32, i32) {
    %c0_i32 = arith.constant 0 : i32
    %c0_i32_0 = arith.constant 0 : i32
    %c0_i32_1 = arith.constant 0 : i32
    return %c0_i32, %c0_i32_0 : i32, i32
  }
  func.func @transform_5(%arg0: i32) -> (i32, i32) {
    %c0_i32 = arith.constant 0 : i32
    %c0_i32_0 = arith.constant 0 : i32
    return %c0_i32, %arg0 : i32, i32
  }
  func.func @transform_6(%arg0: i32) -> (i32, i32) {
    %c0_i32 = arith.constant 0 : i32
    %c0_i32_0 = arith.constant 0 : i32
    return %c0_i32, %arg0 : i32, i32
  }
}

</mosaic_0001>

<bundles_post_ra>
// kernel: tpu_custom_call.1
= control target key start
LH: loop header
LB: loop body
LE: loop exit
PB: predicated region body
PF: predicated region fallthrough
CT: control target
= control target key end

     0   :  { %11 = vsyncpa [#allocation3], 0  ;;  %s1488_s0 = inlined_call_operand.vmem [shape: f32[4,36], index: 0, kind: input, shape index: {}]   ;;  %s1489_s1 = inlined_call_operand.vmem [shape: f32[4,1], index: 1, kind: input, shape index: {}]   ;;  %s1490_s2 = inlined_call_operand.vmem [shape: f32[4,9], index: 2, kind: input, shape index: {}]   ;;  %s1491_s3 = inlined_call_operand.vmem [shape: f32[4,1], index: 3, kind: input, shape index: {}]   ;;  %s1492_s4 = inlined_call_operand.vmem [shape: f32[8,256], index: 4, kind: input, shape index: {}]   ;;  %s1493_s5 = inlined_call_operand.hbm [shape: f32[4,512], index: 5, kind: input, shape index: {}]   ;;  %s1494_s6 = inlined_call_operand.hbm [shape: f32[8,512], index: 6, kind: output, shape index: {}]  }
   0x1   :  { %13 = vsyncpa [#allocation3 + $0x1], 0 }
   0x2   :  { %14 = vsyncpa [#allocation4], 0 }
   0x3   :  { %16 = vsyncpa [#allocation4 + $0x1], 0  ;;  %s1036_s21 = smov 0   ;;  %s1038_s22 = smov 0  }
   0x4   :  { %s1040_s23 = smov 0   ;;  %s1042_s24 = smov 0  }
   0x5 LB: > { %s1057_s25 = sadd.s32 4294967295, %s979_s24   ;;  %s780_s26 = sadd.s32 4294967294, %s979_s24   ;;  %s979_s24 = sphi %s1042_s24, %s1509_s24   ;;  %s975_s23 = sphi %s1040_s23, %s1508_s23   ;;  %s971_s22 = sphi %s1038_s22, %s1507_s22   ;;  %s967_s21 = sphi %s1036_s21, %s1506_s21  }
   0x6   : > { %s1061_s27 = sadd.s32 1, %s979_s24   ;;  %s134_s28 = sadd.s32 1, %s975_s23 }
   0x7   : > { %s131_s29 = ssub.s32 %s979_s24, %s1061_s27  ;;  %p141_p0 = scmp.ne.s32.totalorder %s975_s23, %s971_s22 }
   0x8   : > { %p132_p1 = scmp.eq.s32.totalorder %s131_s29, 0  ;;  %p142_p2 = scmp.eq.s32.totalorder %s979_s24, 0 }
   0x9   : > { %p147_p3 = scmp.ne.s32.totalorder %s971_s22, %s967_s21  ;;  %p148_p4 = scmp.eq.s32.totalorder %s1057_s25, 0 }
   0xa   : > { %s1073_s30 = scalar_select %p132_p1, %s975_s23, %s134_s28  }
   0xb   : > { %p1075_p5 = por %p142_p2, %p141_p0  ;;  %p1079_p6 = por %p148_p4, %p147_p3 }
   0xc   : > { %p171_p7 = scmp.eq.s32.totalorder %s1057_s25, 1  ;;  %p177_p8 = scmp.eq.s32.totalorder %s780_s26, 1 }
   0xd   : > { %p819_p10 = scmp.lt.s32.totalorder %s979_s24, 2  ;;  %s212_s11 = sand.u32 1, %s975_s23  }
   0xe   : > { %p1086_p11 = por %p171_p7, %p141_p0  ;;  %p1090_p12 = por %p177_p8, %p147_p3 }
   0xf   : > { %s797_s12 = sshll.u32 %s979_s24, 7  ;;  %s783_s13 = sshll.u32 %s212_s11, 3 }
  0x10   : > { %s1498_s9 = scalar_select %p1086_p11, 1, 0 }
  0x11   : > { %s1499_s10 = scalar_select %p1090_p12, 1, 0 }
  0x12   : > { %s1099_s16 = scalar_lea.hbm %s1493_s5, %s797_s12  ;;  %s216_s17 = scalar_lea.vmem [#allocation2], %s783_s13 }
  0x13   : > { %s224_s18 = sshll.u32 %s216_s17, 4  ;;  %p1103_p13 = pnand %p819_p10, %p1075_p5  ;;  %s1107_s18 = int_to_ptr.vmem [resolvable:$true] %s224_s18 }
  0x14   : > { %s213_s20 = scalar_lea.sflag [#allocation3], %s212_s11  ;;  %s883_s26 = scalar_lea.hbm %s1099_s16, 128 }
  0x15   : > { %p884_p2 = scmp.ne.s32.totalorder %s1099_s16, %s883_s26  ;;  %p885_p3 = pneg %p1103_p13 }
  0x16   : > { %s888_s7 = scalar_lea.hbm %s1493_s5, 256  ;;  %p889_p5 = scmp.lt.u32.totalorder %s1099_s16, %s1493_s5 }
  0x17   : > { %p886_p4 = pnand %p885_p3, %p884_p2  ;;  %p890_p8 = scmp.lt.u32.totalorder %s888_s7, %s883_s26 }
  0x18   : > { %p892_p9 = scmp.lt.u32.totalorder %s883_s26, %s1099_s16 }
  0x19   : > { %p887_p7 = pneg %p886_p4  ;;  %p891_p10 = por %p890_p8, %p889_p5 }
  0x1b   : > { %p893_p0 = por %p892_p9, %p891_p10 }
  0x1d   : > { %p894_p1 = pnand %p893_p0, %p887_p7 }
  0x1f   : > { %897 = shalt.err (!%p894_p1)
}
  0x20   : > { %s898_s11 = scalar_lea.vmem %s1107_s18, 128  ;;  %s981_s14 = smov [#allocation2]  }
  0x21   : > { %p899_p2 = scmp.ne.s32.totalorder %s1107_s18, %s898_s11  ;;  %s903_s15 = sshll.u32 %s981_s14, 4  ;;  %s904_s15 = int_to_ptr.vmem [resolvable:$false] %s903_s15 }
  0x22   : > { %s905_s17 = scalar_lea.vmem %s904_s15, 256  ;;  %p906_p11 = scmp.lt.s32.totalorder %s1107_s18, %s904_s15 }
  0x23   : > { %p901_p4 = pnand %p899_p2, %p885_p3  ;;  %p907_p5 = scmp.lt.s32.totalorder %s905_s17, %s898_s11 }
  0x25   : > { %p902_p12 = pneg %p901_p4  ;;  %p908_p8 = por %p907_p5, %p906_p11 }
  0x27   : > { %p909_p9 = pnand %p908_p8, %p902_p12 }
  0x29   : > { %912 = shalt.err (!%p909_p9)
}
  0x2a   : > { %814 = dma.hbm_to_vmem [thread:$0]  (!%p1103_p13), %s1099_s16, 128, %s1107_s18, %s213_s20  }
  0x2b   : > { %p1501_p0 = scmp.lt.s32.totalorder %s979_s24, 3  ;;  %p1502_p1 = scmp.ge.s32.totalorder %s979_s24, 1 }
  0x2d   : > { %p230_p3 = pnand %p1502_p1, %p1501_p0 }
  0x2e   : > { %s1141_s26 = sand.u32 (!%p230_p3), 1, %s971_s22  }
  0x2f   : > { %233 = sbr.rel (%p230_p3) target bundleno = 610 (0x262), region = 44  ;;  %s787_s28 = sshll.u32 (!%p230_p3), %s1141_s26, 3 }
  0x30   : > { %s236_s29 = scalar_lea.sflag (!%p230_p3), [#allocation3], %s1141_s26  ;;  %s239_s7 = scalar_lea.vmem (!%p230_p3), [#allocation2], %s787_s28 }
  0x36   : > { %958 = dma.done.wait (%p1079_p6), %s236_s29, 128  }
  0x37   : > { %960 = vsyncadd (%p1079_p6), %s236_s29, 4294967168  ;;  %v1149_v0 = vld [vmem:[%s239_s7] sm:$0xff]  ;;  %s982_s16 = smov 1   ;;  %s983_s18 = smov 16   ;;  %v988_v2 = vmov 0.0   ;;  %v990_v3 = vmov 0   ;;  %v284_v14 = vlaneseq }
  0x38   : > { %333 = vrot.lane.b32.xlu1 %v1149_v0, %s982_s16  ;;  %299 = vrot.lane.b32.xlu0 %v1149_v0, %s983_s18  ;;  %v1157_v1 = vcombine.high %v1149_v0, %v1149_v0  ;;  %s984_s19 = smov 17   ;;  %s985_s8 = smov 15   ;;  %v272_v4 = vld [vmem:[%s1489_s1] sm:$0xf]  ;;  %v992_v6 = vmov 2   ;;  %v993_v7 = vmov 1  }
  0x39   : > { %s986_s20 = smov 127   ;;  %s987_s12 = smov 112   ;;  %530 = vmatprep.mubr.f32.mxu0 %v988_v2  ;;  %871 = vset.pattern.permute.xlu0 %v990_v3  ;;  %v273_v5 = vld [vmem:[%s1490_s2] sm:$0xf]  ;;  %v994_v8 = vmov 3   ;;  %v995_v9 = vmov 6  }
  0x3a   : > { %s989_s13 = smov 113   ;;  %872 = vset.pattern.permute.xlu1 %v990_v3  ;;  %s991_s11 = smov 111   ;;  %v996_v10 = vmov 4   ;;  %v997_v11 = vmov 7   ;;  %v998_v12 = vmov 5   ;;  %v999_v13 = vmov 8  }
  0x3b   : > { %v1193_v15 = vshrl.u32 %v284_v14, 7  ;;  %v1195_v16 = vand.u32 127, %v284_v14  ;;  %v1201_v20 = vld [vmem:[%s1492_s4] sm:$0xff]  ;;  %v1206_v21 = vld [vmem:[%s1492_s4 + $0x8] sm:$0xff]  ;;  %vm442_vm4 = vcmask 1043456   ;;  %vm456_vm9 = vcmask 293888  }
  0x3c   : > { %280 = vrot.lane.b32.xlu0 %v1149_v0, %s984_s19  ;;  %335 = vrot.lane.b32.xlu1 %v1157_v1, %s982_s16  ;;  %p1503_p11 = scmp.ne.s32.totalorder %s1498_s9, 0  ;;  %s1000_s14 = smov [#allocation5]  }
  0x3d   : > { %v342_v19 = vsub.s32 3, %v1193_v15  ;;  %v308_v22 = vsub.s32 1, %v1193_v15  ;;  %vm337_vm0 = vcmp.lt.s32.totalorder %v1195_v16, 1  ;;  %v291_v25 = vsub.s32 0, %v1193_v15  ;;  %s917_s15 = sshll.u32 %s1000_s14, 4  ;;  %s918_s15 = int_to_ptr.vmem [resolvable:$false] %s917_s15 }
  0x3e   : > { %vm303_vm1 = vcmp.lt.s32.totalorder %v1195_v16, 16  ;;  %v325_v28 = vsub.s32 2, %v1193_v15  ;;  %vm286_vm2 = vcmp.lt.s32.totalorder %v1195_v16, 17  ;;  %vm320_vm3 = vcmp.lt.s32.totalorder %v1195_v16, 15  ;;  %s919_s17 = scalar_lea.vmem %s918_s15, 512 }
  0x3f   : > { %v1212_v26 = vrot.slane %v1201_v20, %v342_v19  ;;  %v1215_v27 = vrot.slane %v1206_v21, %v342_v19  ;;  %v1224_v31 = vrot.slane %v1201_v20, %v308_v22  ;;  %v1227_v32 = vrot.slane %v1206_v21, %v308_v22 }
  0x40   : > { %282 = vrot.lane.b32.xlu1 %v1157_v1, %s984_s19  ;;  %301 = vrot.lane.b32.xlu0 %v1157_v1, %s983_s18  ;;  %v1231_v33 = vrot.slane %v1201_v20, %v291_v25  ;;  %v1234_v34 = vrot.slane %v1206_v21, %v291_v25  ;;  %v1246_v43 = vrot.slane %v1201_v20, %v325_v28  ;;  %v359_v47 = vsub.s32 4, %v1193_v15 }
  0x41   : > { %v1249_v44 = vrot.slane %v1206_v21, %v325_v28  ;;  %vm354_vm5 = vcmp.lt.s32.totalorder %v1195_v16, 127  ;;  %v393_v52 = vsub.s32 6, %v1193_v15  ;;  %vm388_vm6 = vcmp.lt.s32.totalorder %v1195_v16, 112 }
  0x42   : > { %v1267_v61 = vrot.slane %v1201_v20, %v359_v47  ;;  %v1270_v62 = vrot.slane %v1206_v21, %v359_v47  ;;  %vm371_vm7 = vcmp.lt.s32.totalorder %v1195_v16, 113  ;;  %vm405_vm8 = vcmp.lt.s32.totalorder %v1195_v16, 111 }
  0x44   : > { %318 = vrot.lane.b32.xlu1 %v1157_v1, %s985_s8  ;;  %316 = vrot.lane.b32.xlu0 %v1149_v0, %s985_s8 }
  0x48   : > { %352 = vrot.lane.b32.xlu1 %v1157_v1, %s986_s20  ;;  %350 = vrot.lane.b32.xlu0 %v1149_v0, %s986_s20 }
  0x4c   : > { %386 = vrot.lane.b32.xlu1 %v1157_v1, %s987_s12  ;;  %384 = vrot.lane.b32.xlu0 %v1149_v0, %s987_s12 }
  0x50   : > { %369 = vrot.lane.b32.xlu1 %v1157_v1, %s989_s13  ;;  %367 = vrot.lane.b32.xlu0 %v1149_v0, %s989_s13 }
  0x54   : > { %403 = vrot.lane.b32.xlu1 %v1157_v1, %s991_s11  ;;  %401 = vrot.lane.b32.xlu0 %v1149_v0, %s991_s11 }
  0x58   : > { %453 = vperm.xlu0 %871, %v272_v4   ;;  %549 = vperm.xlu1 %872, %v273_v5  }
  0x5c   : > { %874 = vset.pattern.permute.xlu0 %v992_v6  ;;  %873 = vset.pattern.permute.xlu1 %v993_v7 }
  0x5d   : > { %581 = vperm.xlu0 %874, %v273_v5   ;;  %565 = vperm.xlu1 %873, %v273_v5  }
  0x61   : > { %875 = vset.pattern.permute.xlu0 %v994_v8  ;;  %878 = vset.pattern.permute.xlu1 %v995_v9 }
  0x62   : > { %597 = vperm.xlu0 %875, %v273_v5   ;;  %637 = vperm.xlu1 %878, %v273_v5  }
  0x66   : > { %876 = vset.pattern.permute.xlu0 %v996_v10  ;;  %879 = vset.pattern.permute.xlu1 %v997_v11  ;;  %v1282_v11 = vrot.slane %v1201_v20, %v393_v52 }
  0x67   : > { %605 = vperm.xlu0 %876, %v273_v5   ;;  %653 = vperm.xlu1 %879, %v273_v5  }
  0x6b   : > { %877 = vset.pattern.permute.xlu0 %v998_v12  ;;  %v1285_v12 = vrot.slane %v1206_v21, %v393_v52 }
  0x6c   : > { %621 = vperm.xlu0 %877, %v273_v5  }
  0x70   : > { %880 = vset.pattern.permute.xlu0 %v999_v13  ;;  %v376_v13 = vsub.s32 5, %v1193_v15 }
  0x71   : > { %669 = vperm.xlu0 %880, %v273_v5  }
  0x75   : > { %881 = vset.pattern.permute.xlu0 %v990_v3 }
  0xaa   : > { %v334_v17 = vpop.permute.xlu1 %333  ;;  %v300_v18 = vpop.permute.xlu0 %299 }
  0xae   : > { %v281_v23 = vpop.permute.xlu0 %280  ;;  %v336_v24 = vpop.permute.xlu1 %335 }
  0xaf   : > { %v338_v29 = vsel %vm337_vm0, %v334_v17, %v336_v24  ;;  %v339_v30 = vsel %vm337_vm0, %v336_v24, %v334_v17  ;;  %v410_v24 = vsub.s32 7, %v1193_v15 }
  0xb0   : > { %v348_v37 = vmul.f32 %v1212_v26, %v339_v30  ;;  %v349_v38 = vmul.f32 %v1215_v27, %v338_v29  ;;  %v1299_v29 = vrot.slane %v1201_v20, %v376_v13  ;;  %v1302_v30 = vrot.slane %v1206_v21, %v376_v13 }
  0xb1   : > { %v1315_v47 = vrot.slane %v1201_v20, %v410_v24 }
  0xb2   : > { %v283_v35 = vpop.permute.xlu1 %282  ;;  %v302_v36 = vpop.permute.xlu0 %301  ;;  %v426_v53 = vrot.slane %v348_v37, 4  ;;  %v427_v54 = vrot.slane %v349_v38, 4 }
  0xb3   : > { %v304_v39 = vsel %vm303_vm1, %v300_v18, %v302_v36  ;;  %v305_v40 = vsel %vm303_vm1, %v302_v36, %v300_v18  ;;  %v287_v45 = vsel %vm286_vm2, %v281_v23, %v283_v35  ;;  %v288_v46 = vsel %vm286_vm2, %v283_v35, %v281_v23 }
  0xb4   : > { %v314_v41 = vmul.f32 %v1224_v31, %v305_v40  ;;  %v315_v42 = vmul.f32 %v1227_v32, %v304_v39  ;;  %v297_v57 = vmul.f32 %v1231_v33, %v288_v46  ;;  %v298_v58 = vmul.f32 %v1234_v34, %v287_v45 }
  0xb5   : > { %v1310_v40 = vrot.slane %v1206_v21, %v410_v24 }
  0xb6   : > { %v420_v48 = vrot.slane %v314_v41, 4  ;;  %v421_v49 = vrot.slane %v315_v42, 4  ;;  %v319_v50 = vpop.permute.xlu1 %318  ;;  %v317_v51 = vpop.permute.xlu0 %316 }
  0xb7   : > { %v321_v55 = vsel %vm320_vm3, %v317_v51, %v319_v50  ;;  %v322_v56 = vsel %vm320_vm3, %v319_v50, %v317_v51 }
  0xb8   : > { %v331_v59 = vmul.f32 %v1246_v43, %v322_v56  ;;  %v332_v60 = vmul.f32 %v1249_v44, %v321_v55  ;;  %v444_v3 = vsel %vm442_vm4, %v298_v58, %v421_v49  ;;  %v443_v5 = vsel %vm442_vm4, %v297_v57, %v420_v48 }
  0xba   : > { %v353_v63 = vpop.permute.xlu1 %352  ;;  %v351_v2 = vpop.permute.xlu0 %350  ;;  %v446_v4 = vsel %vm442_vm4, %v332_v60, %v427_v54  ;;  %v445_v6 = vsel %vm442_vm4, %v331_v59, %v426_v53 }
  0xbb   : > { %v355_v7 = vsel %vm354_vm5, %v351_v2, %v353_v63  ;;  %v356_v8 = vsel %vm354_vm5, %v353_v63, %v351_v2  ;;  %v799_v9 = vpack.c.bf16 %v446_v4, %v444_v3  ;;  %v801_v10 = vpack.c.bf16 %v445_v6, %v443_v5  ;;  %v274_v4 = vld [vmem:[%s1491_s3] sm:$0xf] }
  0xbc   : > { %v365_v14 = vmul.f32 %v1267_v61, %v355_v7  ;;  %v366_v17 = vmul.f32 %v1270_v62, %v356_v8 }
  0xbd   : > { %800 = vmatprep.subr.bf16.mxu0 %v799_v9 }
  0xbe   : > { %v387_v18 = vpop.permute.xlu1 %386  ;;  %802 = vmatpush1.bf16.msra.mxu0 %v801_v10  ;;  %v385_v19 = vpop.permute.xlu0 %384  ;;  %v432_v35 = vrot.slane %v365_v14, 4  ;;  %v433_v36 = vrot.slane %v366_v17, 4 }
  0xbf   : > { %v389_v22 = vsel %vm388_vm6, %v385_v19, %v387_v18  ;;  %v390_v23 = vsel %vm388_vm6, %v387_v18, %v385_v19 }
  0xc0   : > { %v399_v25 = vmul.f32 %v1282_v11, %v389_v22  ;;  %v400_v28 = vmul.f32 %v1285_v12, %v390_v23  ;;  %v448_v49 = vsel %vm442_vm4, %v1157_v1, %v433_v36  ;;  %v447_v21 = vsel %vm442_vm4, %v1149_v0, %v432_v35  ;;  %v271_v0 = vld [vmem:[%s1488_s0] sm:$0xf] }
  0xc2   : > { %v370_v37 = vpop.permute.xlu1 %369  ;;  %v368_v38 = vpop.permute.xlu0 %367  ;;  %v438_v41 = vrot.slane %v399_v25, 4  ;;  %v439_v42 = vrot.slane %v400_v28, 4 }
  0xc3   : > { %v372_v39 = vsel %vm371_vm7, %v368_v38, %v370_v37  ;;  %v373_v15 = vsel %vm371_vm7, %v370_v37, %v368_v38 }
  0xc4   : > { %v382_v45 = vmul.f32 %v1299_v29, %v372_v39  ;;  %v383_v46 = vmul.f32 %v1302_v30, %v373_v15 }
  0xc6   : > { %v404_v48 = vpop.permute.xlu1 %403  ;;  %v450_v50 = vsel %vm442_vm4, %v383_v46, %v439_v42  ;;  %v402_v51 = vpop.permute.xlu0 %401  ;;  %v449_v52 = vsel %vm442_vm4, %v382_v45, %v438_v41 }
  0xc7   : > { %v803_v53 = vpack.c.bf16 %v450_v50, %v448_v49  ;;  %v406_v54 = vsel %vm405_vm8, %v402_v51, %v404_v48  ;;  %v407_v20 = vsel %vm405_vm8, %v404_v48, %v402_v51  ;;  %v805_v55 = vpack.c.bf16 %v449_v52, %v447_v21 }
  0xc8   : > { %v417_v56 = vmul.f32 %v1310_v40, %v407_v20  ;;  %v416_v1 = vmul.f32 %v1315_v47, %v406_v54 }
  0xc9   : > { %804 = vmatprep.subr.bf16.mxu0 %v803_v53 }
  0xca   : > { %806 = vmatpush1.bf16.msra.mxu0 %v805_v55 }
  0xcb   : > { %789 = vmatprep.subr.msk.mxu0 %vm442_vm4, %v417_v56 }
  0xce   : > { %790 = vmatpush1.msk.msra.mxu0 %vm442_vm4, %v416_v1 }
  0xcf   : > { %791 = vmatmul.mubr.msk.f32.vlgmr.msra.gmra.mrb[0].mxu0 %vm456_vm9, %v271_v0 }
  0xd7   : > { %v454_v57 = vpop.permute.xlu0 %453  ;;  %v550_v5 = vpop.permute.xlu1 %549 }
  0xdc   : > { %v566_v6 = vpop.permute.xlu1 %565  ;;  %v582_v8 = vpop.permute.xlu0 %581 }
  0xe1   : > { %v1373_v7 = vpop.permute.xlu1 %637  ;;  %v598_v10 = vpop.permute.xlu0 %597 }
  0xe6   : > { %v1375_v9 = vpop.permute.xlu1 %653  ;;  %v606_v14 = vpop.permute.xlu0 %605 }
  0xeb   : > { %v622_v18 = vpop.permute.xlu0 %621 }
  0xf0   : > { %v1377_v22 = vpop.permute.xlu0 %669 }
 0x1a2   : > { %v532_v58 = vpop.f32.mrb[0].mxu0 }
 0x1a3   : > { %v533_v59 = vadd.f32 %v532_v58, %v454_v57  ;;  %v534_v60 = vpop.f32.mrb[1].mxu0 }
 0x1a4   : > { %v535_v2 = vadd.f32 %v534_v60, %v454_v57 }
 0x1a5   : > { %v1334_v63 = vmax.f32 %v533_v59, 0.0 }
 0x1a6   : > { %v1344_v3 = vmax.f32 %v535_v2, 0.0 }
 0x1a7   : > { %556 = vrot.lane.b32.xlu0 %v1334_v63, %s983_s18  ;;  %539 = vrot.lane.b32.xlu1 %v1334_v63, %s984_s19 }
 0x1ab   : > { %628 = vrot.lane.b32.xlu0 %v1334_v63, %s989_s13  ;;  %572 = vrot.lane.b32.xlu1 %v1334_v63, %s985_s8 }
 0x1af   : > { %614 = vrot.lane.b32.xlu0 %v1344_v3, %s986_s20  ;;  %588 = vrot.lane.b32.xlu1 %v1334_v63, %s982_s16 }
 0x1b3   : > { %660 = vrot.lane.b32.xlu0 %v1334_v63, %s991_s11  ;;  %612 = vrot.lane.b32.xlu1 %v1334_v63, %s986_s20 }
 0x1b7   : > { %644 = vrot.lane.b32.xlu1 %v1334_v63, %s987_s12  ;;  %678 = vperm.xlu0 %881, %v274_v4  }
 0x1bb   : > { %541 = vrot.lane.b32.xlu1 %v1344_v3, %s984_s19 }
 0x1bf   : > { %558 = vrot.lane.b32.xlu1 %v1344_v3, %s983_s18  ;;  %s798_s18 = sshll.u32 %s1057_s25, 8  ;;  %s696_s25 = scalar_lea.sflag [#allocation4], %s1141_s26 }
 0x1c3   : > { %574 = vrot.lane.b32.xlu1 %v1344_v3, %s985_s8 }
 0x1c7   : > { %590 = vrot.lane.b32.xlu1 %v1344_v3, %s982_s16  ;;  %s788_s16 = sshll.u32 %s1141_s26, 4 }
 0x1c8   : > { %s267_s19 = scalar_lea.vmem [#allocation5], %s788_s16 }
 0x1c9   : > { %s710_s8 = sshll.u32 %s267_s19, 4  ;;  %s1442_s8 = int_to_ptr.vmem [resolvable:$true] %s710_s8 }
 0x1ca   : > { %p920_p7 = scmp.lt.s32.totalorder %s1442_s8, %s918_s15 }
 0x1cb   : > { %630 = vrot.lane.b32.xlu1 %v1344_v3, %s989_s13  ;;  %s1440_s13 = scalar_lea.hbm %s1494_s6, %s798_s18 }
 0x1cf   : > { %646 = vrot.lane.b32.xlu1 %v1344_v3, %s987_s12 }
 0x1d3   : > { %662 = vrot.lane.b32.xlu1 %v1344_v3, %s991_s11  ;;  %s913_s11 = scalar_lea.vmem %s1442_s8, 256 }
 0x1d4   : > { %p914_p6 = scmp.ne.s32.totalorder %s1442_s8, %s913_s11  ;;  %p921_p10 = scmp.lt.s32.totalorder %s919_s17, %s913_s11 }
 0x1d6   : > { %p915_p12 = pnand %p914_p6, %p1503_p11  ;;  %p922_p2 = por %p921_p10, %p920_p7 }
 0x1d8   : > { %p916_p13 = pneg %p915_p12 }
 0x1da   : > { %p923_p4 = pnand %p922_p2, %p916_p13 }
 0x219   : > { %v540_v13 = vpop.permute.xlu1 %539  ;;  %v557_v25 = vpop.permute.xlu0 %556 }
 0x21d   : > { %v573_v17 = vpop.permute.xlu1 %572  ;;  %v629_v35 = vpop.permute.xlu0 %628 }
 0x221   : > { %v589_v19 = vpop.permute.xlu1 %588  ;;  %v615_v51 = vpop.permute.xlu0 %614 }
 0x225   : > { %v613_v23 = vpop.permute.xlu1 %612 }
 0x229   : > { %v645_v24 = vpop.permute.xlu1 %644 }
 0x22d   : > { %v542_v28 = vpop.permute.xlu1 %541 }
 0x22e   : > { %v543_v37 = vsel %vm286_vm2, %v540_v13, %v542_v28  ;;  %v544_v38 = vsel %vm286_vm2, %v542_v28, %v540_v13  ;;  %v608_v13 = vmul.f32 %v606_v14, %v1334_v63 }
 0x22f   : > { %v545_v45 = vmul.f32 %v544_v38, %v1231_v33  ;;  %v546_v46 = vmul.f32 %v543_v37, %v1234_v34  ;;  %v617_v33 = vsel %vm354_vm5, %v615_v51, %v613_v23 }
 0x230   : > { %v619_v60 = vmul.f32 %v617_v33, %v1270_v62 }
 0x231   : > { %v559_v36 = vpop.permute.xlu1 %558  ;;  %v552_v34 = vmul.f32 %v550_v5, %v545_v45  ;;  %v553_v54 = vmul.f32 %v550_v5, %v546_v46 }
 0x232   : > { %v560_v39 = vsel %vm303_vm1, %v557_v25, %v559_v36  ;;  %v561_v15 = vsel %vm303_vm1, %v559_v36, %v557_v25  ;;  %v625_v28 = vmul.f32 %v622_v18, %v619_v60 }
 0x233   : > { %v562_v41 = vmul.f32 %v561_v15, %v1224_v31  ;;  %v563_v42 = vmul.f32 %v560_v39, %v1227_v32  ;;  %v616_v32 = vsel %vm354_vm5, %v613_v23, %v615_v51 }
 0x234   : > { %v618_v59 = vmul.f32 %v616_v32, %v1267_v61 }
 0x235   : > { %v575_v48 = vpop.permute.xlu1 %574  ;;  %v568_v21 = vmul.f32 %v566_v6, %v562_v41  ;;  %v569_v52 = vmul.f32 %v566_v6, %v563_v42  ;;  %v661_v41 = vpop.permute.xlu0 %660 }
 0x236   : > { %v576_v49 = vsel %vm320_vm3, %v573_v17, %v575_v48  ;;  %v577_v50 = vsel %vm320_vm3, %v575_v48, %v573_v17  ;;  %v609_v17 = vmul.f32 %v606_v14, %v1344_v3  ;;  %v624_v25 = vmul.f32 %v622_v18, %v618_v59 }
 0x237   : > { %v578_v53 = vmul.f32 %v577_v50, %v1246_v43  ;;  %v579_v31 = vmul.f32 %v576_v49, %v1249_v44  ;;  %v570_v43 = vadd.f32 %v568_v21, %v552_v34  ;;  %v571_v57 = vadd.f32 %v569_v52, %v553_v54 }
 0x239   : > { %v584_v20 = vmul.f32 %v582_v8, %v578_v53  ;;  %v585_v55 = vmul.f32 %v582_v8, %v579_v31  ;;  %v591_v56 = vpop.permute.xlu1 %590  ;;  %v679_v52 = vpop.permute.xlu0 %678 }
 0x23a   : > { %v592_v1 = vsel %vm337_vm0, %v589_v19, %v591_v56  ;;  %v593_v0 = vsel %vm337_vm0, %v591_v56, %v589_v19 }
 0x23b   : > { %v594_v44 = vmul.f32 %v593_v0, %v1212_v26  ;;  %v595_v58 = vmul.f32 %v592_v1, %v1215_v27  ;;  %v586_v2 = vadd.f32 %v584_v20, %v570_v43  ;;  %v587_v4 = vadd.f32 %v585_v55, %v571_v57 }
 0x23d   : > { %v600_v5 = vmul.f32 %v598_v10, %v594_v44  ;;  %v601_v6 = vmul.f32 %v598_v10, %v595_v58  ;;  %v631_v8 = vpop.permute.xlu1 %630 }
 0x23e   : > { %v632_v19 = vsel %vm371_vm7, %v629_v35, %v631_v8  ;;  %v633_v26 = vsel %vm371_vm7, %v631_v8, %v629_v35 }
 0x23f   : > { %v602_v27 = vadd.f32 %v600_v5, %v586_v2  ;;  %v603_v23 = vadd.f32 %v601_v6, %v587_v4  ;;  %v634_v61 = vmul.f32 %v632_v19, %v1299_v29  ;;  %v635_v62 = vmul.f32 %v633_v26, %v1302_v30 }
 0x241   : > { %v610_v10 = vadd.f32 %v608_v13, %v602_v27  ;;  %v611_v36 = vadd.f32 %v609_v17, %v603_v23  ;;  %v647_v37 = vpop.permute.xlu1 %646  ;;  %v640_v38 = vmul.f32 %v1373_v7, %v634_v61  ;;  %v641_v14 = vmul.f32 %v1373_v7, %v635_v62 }
 0x242   : > { %v648_v39 = vsel %vm388_vm6, %v645_v24, %v647_v37  ;;  %v649_v35 = vsel %vm388_vm6, %v647_v37, %v645_v24 }
 0x243   : > { %v650_v29 = vmul.f32 %v648_v39, %v1282_v11  ;;  %v651_v30 = vmul.f32 %v649_v35, %v1285_v12  ;;  %v626_v15 = vadd.f32 %v624_v25, %v610_v10  ;;  %v627_v18 = vadd.f32 %v625_v28, %v611_v36 }
 0x245   : > { %v656_v42 = vmul.f32 %v1375_v9, %v650_v29  ;;  %v657_v45 = vmul.f32 %v1375_v9, %v651_v30  ;;  %v663_v46 = vpop.permute.xlu1 %662  ;;  %v642_v7 = vadd.f32 %v640_v38, %v626_v15  ;;  %v643_v48 = vadd.f32 %v641_v14, %v627_v18 }
 0x246   : > { %v664_v49 = vsel %vm405_vm8, %v661_v41, %v663_v46  ;;  %v665_v24 = vsel %vm405_vm8, %v663_v46, %v661_v41 }
 0x247   : > { %v666_v11 = vmul.f32 %v664_v49, %v1315_v47  ;;  %v667_v12 = vmul.f32 %v665_v24, %v1310_v40  ;;  %v658_v50 = vadd.f32 %v656_v42, %v642_v7  ;;  %v659_v51 = vadd.f32 %v657_v45, %v643_v48 }
 0x249   : > { %v672_v21 = vmul.f32 %v1377_v22, %v666_v11  ;;  %v673_v9 = vmul.f32 %v1377_v22, %v667_v12 }
 0x24b   : > { %v674_v53 = vadd.f32 %v672_v21, %v658_v50  ;;  %v675_v31 = vadd.f32 %v673_v9, %v659_v51 }
 0x24d   : > { %v681_v32 = vadd.f32 %v679_v52, %v674_v53  ;;  %v682_v33 = vadd.f32 %v679_v52, %v675_v31 }
 0x24f   : > { %v683_v16 = vmax.f32 %v681_v32, 0.0  ;;  %v684_v34 = vmax.f32 %v682_v33, 0.0 }
 0x251   : > { %v687_v40 = vrot.slane %v683_v16, 4  ;;  %v688_v47 = vrot.slane %v684_v34, 4 }
 0x253   : > { %v691_v22 = vsel %vm442_vm4, %v1334_v63, %v687_v40  ;;  %v692_v54 = vsel %vm442_vm4, %v1344_v3, %v688_v47 }
 0x254   : > { %693 = vst [vmem:[%s267_s19] sm:$0xff] %v691_v22  ;;  %694 = vst [vmem:[%s267_s19 + $0x8] sm:$0xff] %v692_v54 }
 0x255   : > { %926 = shalt.err (!%p923_p4)
}
 0x256   : > { %s927_s26 = scalar_lea.hbm %s1440_s13, 256  ;;  %s931_s7 = scalar_lea.hbm %s1494_s6, 512 }
 0x257   : > { %p928_p5 = scmp.ne.s32.totalorder %s1440_s13, %s927_s26  ;;  %p932_p0 = scmp.lt.u32.totalorder %s1440_s13, %s1494_s6 }
 0x258   : > { %p933_p1 = scmp.lt.u32.totalorder %s931_s7, %s927_s26  ;;  %p935_p6 = scmp.lt.u32.totalorder %s927_s26, %s1440_s13 }
 0x259   : > { %p929_p8 = pnand %p928_p5, %p1503_p11 }
 0x25a   : > { %p934_p3 = por %p933_p1, %p932_p0 }
 0x25b   : > { %p930_p9 = pneg %p929_p8 }
 0x25c   : > { %p936_p12 = por %p935_p6, %p934_p3 }
 0x25e   : > { %p937_p13 = pnand %p936_p12, %p930_p9 }
 0x260   : > { %940 = shalt.err (!%p937_p13)
}
 0x261   : > { %809 = dma.vmem_to_hbm [thread:$0]  (%p1503_p11), %s1442_s8, 256, %s1440_s13, %s696_s25  }
 0x262 PF: > { %s722_s19 = sand.u32 1, %s967_s21   ;;  %p1504_p7 = scmp.ne.s32.totalorder %s1499_s10, 0 }
 0x263   : > { %p1505_p10 = scmp.ge.s32.totalorder %s979_s24, 2  ;;  %s723_s20 = scalar_lea.sflag [#allocation4], %s722_s19 }
 0x265   : > { %p816_p2 = pnand %p1505_p10, %p1504_p7 }
 0x267   : > { %962 = dma.done.wait (!%p816_p2), %s723_s20, 256  }
 0x268   : > { %964 = vsyncadd (!%p816_p2), %s723_s20, 4294967040  ;;  %p19_p4 = scmp.ge.s32.totalorder %s1061_s27, 4   ;;  %s1506_s21 = smov %s971_s22 }
 0x269   : > { %s1507_s22 = smov %s975_s23  ;;  %s1508_s23 = smov %s1073_s30 }
 0x26a   : > { %s1509_s24 = smov %s1061_s27  ;;  %21 = sbr.rel (!%p19_p4) target bundleno = 5 (0x5), region = 89 }
 0x271   :  { %728 = vsyncpa [#allocation3], 1 }
 0x272   :  { %730 = vsyncpa [#allocation3 + $0x1], 1 }
 0x273   :  { %731 = vsyncpa [#allocation4], 1 }
 0x274   :  { %733 = vsyncpa [#allocation4 + $0x1], 1 }

</bundles_post_ra>
